<compile_context>
chip_gen: v6e
topology: v6e:2x2x1
jax: 0.10.0
libtpu: 0.0.40
codegen_flags: <defaults>
</compile_context>

<pallas_src>
import functools

import jax
import jax.numpy as jnp
import numpy as np
from jax import lax
from jax.experimental import pallas as pl
from jax.experimental.pallas import tpu as pltpu


def _round_up(x, m):
    return (x + m - 1) // m * m


def _cdiv(a, b):
    return -(-a // b)


def basecnn_kernel(colid_ref, wc_ref, bc_ref, w1_ref, b1_ref, w2_ref, b2_ref, o_ref,
                   *, n_taps, lout, lpad):
    m = colid_ref.shape[0]            # TB * Lpad flattened matmul rows
    ckpad = wc_ref.shape[0]
    tb = o_ref.shape[0]

    # Rebuild the 0/1 im2col tile in VMEM from the sparse per-row column indices.
    # OR-accumulate the K compares (they hit distinct columns), single cast to bf16
    # (exact for 0/1), instead of K serialized f32 adds.
    colid = colid_ref[...]                                        # (M, K) int32
    col = lax.broadcasted_iota(jnp.int32, (m, ckpad), 1)
    hit = col == colid[:, 0:1]
    for k in range(1, n_taps):                                    # static, K is small
        hit = jnp.logical_or(hit, col == colid[:, k:k + 1])
    xu = hit.astype(jnp.float32).astype(jnp.bfloat16)             # (M, CKpad) bf16 0/1

    # Conv1d as one big bf16 matmul (f32 accumulate), then embedding Linear + ReLU
    # (dropout p=0.0 is a no-op).
    conv = jnp.dot(xu, wc_ref[...], preferred_element_type=jnp.float32) + bc_ref[...]
    h = jnp.dot(conv.astype(jnp.bfloat16), w1_ref[...],
                preferred_element_type=jnp.float32) + b1_ref[...]
    h = jnp.maximum(h, 0.0)

    # Segmented max over each sequence's Lout positions (Lpad is a multiple of 8, so
    # this reshape is tile-aligned).  Padded positions are masked to 0, which is safe
    # because h >= 0 after ReLU.
    h3 = h.reshape(tb, lpad, h.shape[-1])
    if lout != lpad:
        t_idx = lax.broadcasted_iota(jnp.int32, (tb, lpad, 1), 1)
        h3 = jnp.where(t_idx < lout, h3, 0.0)
    mx = jnp.max(h3, axis=1)                                      # (TB, H2pad)

    # Decoder Linear(2H -> 1): elementwise mul + lane reduction, then bias.
    o_ref[...] = jnp.sum(mx * w2_ref[...], axis=-1, keepdims=True) + b2_ref[...]


def basecnn_forward(x_tokens, kernel_params, *, n_tokens, kernel_size):
    """x_tokens: (B, L) int token ids. Returns (B,) float32, matching PyTorch BaseCNN."""
    del n_tokens  # shape info already baked into the padded kernel weights
    wc, bc, w1, b1, w2, b2 = kernel_params
    B, L = x_tokens.shape
    K = kernel_size
    Lout = L - K + 1
    Lpad = _round_up(Lout, 8)
    CKpad, Hpad = wc.shape
    H2pad = w1.shape[1]

    # ---- per-step chunk sizing: target ~4K matmul rows, capped by a VMEM budget ----
    try:
        vmem_cap = int(getattr(pltpu.get_tpu_info(), "vmem_capacity_bytes", 64 << 20))
    except Exception:
        vmem_cap = 64 << 20
    # Raise the scoped VMEM limit (v5e default 16 MiB / v6e 32 MiB are the binding
    # constraint); stay well under v7x's 64 MiB per-core physical VMEM.
    vmem_limit = int(max(32 << 20, min(vmem_cap - (16 << 20), 96 << 20)))
    # Conservative per-row estimate of in-kernel intermediates (iota + mask + bf16 xu
    # + f32/bf16 conv + f32 h) plus the double-buffered col_ids tile (K pads to 128).
    bytes_per_row = CKpad * 8 + Hpad * 6 + H2pad * 8 + 2 * 128 * 4
    m_cap = max(8, min(20 << 20, vmem_cap // 3) // bytes_per_row)
    m_target = min(4096, m_cap)

    b8 = _round_up(B, 8)
    tb_cap = max(8, (m_target // Lpad) // 8 * 8)
    G = _cdiv(b8, tb_cap)
    if G == 1 and b8 >= 16:
        G = 2                       # keep both v7x TensorCores busy on the parallel axis
    TB = _round_up(_cdiv(b8, G), 8)
    Bpad = TB * G
    M = TB * Lpad                   # matmul rows per grid step

    tok = x_tokens.astype(jnp.int32)
    if Bpad != B:
        tok = jnp.pad(tok, ((0, Bpad - B), (0, 0)))

    # Sparse im2col indices: col_ids[b, t, k] = token[b, t+k]*K + k
    # (the only per-token HBM traffic the kernel reads).
    shifted = jnp.stack([tok[:, k:k + Lout] for k in range(K)], axis=-1)   # (Bpad, Lout, K)
    col_ids = shifted * K + jnp.arange(K, dtype=jnp.int32)
    col_ids = jnp.pad(col_ids, ((0, 0), (0, Lpad - Lout), (0, 0)))         # (Bpad, Lpad, K)
    col_ids = col_ids.reshape(Bpad * Lpad, K)

    flops = 2 * Bpad * Lpad * (CKpad * Hpad + Hpad * H2pad)
    bytes_accessed = int(col_ids.size * 4
                         + (wc.size + w1.size) * 2
                         + (bc.size + b1.size + w2.size + b2.size) * 4
                         + Bpad * 4)

    out = pl.pallas_call(
        functools.partial(basecnn_kernel, n_taps=K, lout=Lout, lpad=Lpad),
        out_shape=jax.ShapeDtypeStruct((Bpad, 1), jnp.float32),
        grid_spec=pltpu.PrefetchScalarGridSpec(
            num_scalar_prefetch=0,
            grid=(G,),
            in_specs=[
                pl.BlockSpec((M, K), lambda g: (g, 0)),         # sparse im2col ids (per chunk)
                pl.BlockSpec((CKpad, Hpad), lambda g: (0, 0)),  # conv weight (bf16, resident)
                pl.BlockSpec((1, Hpad), lambda g: (0, 0)),      # conv bias (f32)
                pl.BlockSpec((Hpad, H2pad), lambda g: (0, 0)),  # embedding weight (bf16)
                pl.BlockSpec((1, H2pad), lambda g: (0, 0)),     # embedding bias (f32)
                pl.BlockSpec((1, H2pad), lambda g: (0, 0)),     # decoder weight row (f32)
                pl.BlockSpec((1, 1), lambda g: (0, 0)),         # decoder bias
            ],
            out_specs=pl.BlockSpec((TB, 1), lambda g: (g, 0)),  # one scalar per sequence
        ),
        compiler_params=pltpu.CompilerParams(
            dimension_semantics=("parallel",),
            vmem_limit_bytes=vmem_limit),
        cost_estimate=pl.CostEstimate(flops=flops, transcendentals=0,
                                      bytes_accessed=bytes_accessed),
    )(col_ids, wc, bc, w1, b1, w2, b2)

    return out[:B, 0]  # matches .squeeze(1)


def make_params(key, n_tokens, kernel_size, input_size):
    """Deterministic synthetic params with PyTorch shapes + zero-padded kernel repack."""
    H, H2, K = input_size, 2 * input_size, kernel_size
    k1, k2, k3, k4, k5, k6 = jax.random.split(key, 6)
    W_enc = 0.1 * jax.random.normal(k1, (H, n_tokens, K), jnp.float32)   # Conv1d weight
    b_enc = 0.1 * jax.random.normal(k2, (H,), jnp.float32)
    W_emb = 0.1 * jax.random.normal(k3, (H2, H), jnp.float32)            # Linear(H -> 2H)
    b_emb = 0.1 * jax.random.normal(k4, (H2,), jnp.float32)
    W_dec = 0.1 * jax.random.normal(k5, (1, H2), jnp.float32)            # Linear(2H -> 1)
    b_dec = 0.1 * jax.random.normal(k6, (1,), jnp.float32)
    torch_params = (W_enc, b_enc, W_emb, b_emb, W_dec, b_dec)

    # Channels-last, right-multiplicand repack, zero-padded to TPU-friendly shapes.
    # Matmul weights are pre-cast to bf16 (f32 accumulation in-kernel).
    CK = n_tokens * K
    CKpad = _round_up(CK, 128)
    Hpad = _round_up(H, 128)
    H2pad = _round_up(H2, 128)

    wc = jnp.zeros((CKpad, Hpad), jnp.float32)
    wc = wc.at[:CK, :H].set(jnp.transpose(W_enc, (1, 2, 0)).reshape(CK, H))  # (ci*K+k, co)
    wc = wc.astype(jnp.bfloat16)
    bc = jnp.zeros((1, Hpad), jnp.float32).at[0, :H].set(b_enc)
    w1 = jnp.zeros((Hpad, H2pad), jnp.float32).at[:H, :H2].set(W_emb.T).astype(jnp.bfloat16)
    b1 = jnp.zeros((1, H2pad), jnp.float32).at[0, :H2].set(b_emb)
    w2 = jnp.zeros((1, H2pad), jnp.float32).at[0, :H2].set(W_dec[0])        # keep f32
    b2 = b_dec.reshape(1, 1)
    kernel_params = (wc, bc, w1, b1, w2, b2)
    return torch_params, kernel_params


def reference_forward(x_tokens, torch_params, *, n_tokens, kernel_size):
    """Pure-JAX f32 replica of the PyTorch forward, for a correctness check."""
    W_enc, b_enc, W_emb, b_emb, W_dec, b_dec = torch_params
    B, L = x_tokens.shape
    K = kernel_size
    Lout = L - K + 1
    onehot = jax.nn.one_hot(x_tokens, n_tokens, dtype=jnp.float32)  # (B, L, C)
    conv = sum(
        jnp.einsum('blc,oc->blo', onehot[:, k:k + Lout, :], W_enc[:, :, k])
        for k in range(K)
    ) + b_enc                                                       # (B, Lout, H)
    h = jnp.maximum(conv @ W_emb.T + b_emb, 0.0)                    # (B, Lout, 2H)
    m = jnp.max(h, axis=1)                                          # (B, 2H)
    return (m @ W_dec.T + b_dec)[:, 0]                              # (B,)


if __name__ == "__main__":
    # Small shapes consistent with the module: batch=2, seq=16, n_tokens=20,
    # kernel_size=5, input_size(hidden)=32. dropout=0.0 -> no-op.
    B, L = 2, 16
    N_TOKENS, KSIZE, INPUT_SIZE = 20, 5, 32

    key = jax.random.PRNGKey(0)
    kp, kx = jax.random.split(key)
    torch_params, kernel_params = make_params(kp, N_TOKENS, KSIZE, INPUT_SIZE)
    x_tokens = jax.random.randint(kx, (B, L), 0, N_TOKENS, dtype=jnp.int32)

    out = basecnn_forward(x_tokens, kernel_params, n_tokens=N_TOKENS, kernel_size=KSIZE)
    out = jax.block_until_ready(out)

    ref = jax.block_until_ready(
        reference_forward(x_tokens, torch_params, n_tokens=N_TOKENS, kernel_size=KSIZE)
    )
    assert out.shape == (B,), out.shape
    # bf16 matmul weights (f32 accumulation) => loosen tolerance vs the f32 reference.
    assert np.allclose(np.asarray(out), np.asarray(ref), rtol=2e-2, atol=2e-2), (out, ref)

    print("KERNEL_OK")
</pallas_src>

<mosaic_0001>
module attributes {stable_mosaic.version = 11 : i64} {
  func.func @basecnn_kernel(%arg0: i32, %arg1: memref<128x5xi32, #tpu.memory_space<vmem>>, %arg2: memref<128x128xbf16, #tpu.memory_space<vmem>>, %arg3: memref<1x128xf32, #tpu.memory_space<vmem>>, %arg4: memref<128x128xbf16, #tpu.memory_space<vmem>>, %arg5: memref<1x128xf32, #tpu.memory_space<vmem>>, %arg6: memref<1x128xf32, #tpu.memory_space<vmem>>, %arg7: memref<1x1xf32, #tpu.memory_space<vmem>>, %arg8: memref<8x1xf32, #tpu.memory_space<vmem>>) attributes {dimension_semantics = [#tpu.dimension_semantics<parallel>], iteration_bounds = array<i64: 1>, scalar_prefetch = 0 : i64, scratch_operands = 0 : i64, tpu.core_type = #tpu.core_type<tc>, window_params = [{transform_indices = @transform_0, window_bounds = array<i64: 128, 5>}, {pipeline_mode = #tpu.pipeline_mode<synchronous>, transform_indices = @transform_1, window_bounds = array<i64: 128, 128>}, {pipeline_mode = #tpu.pipeline_mode<synchronous>, transform_indices = @transform_2, window_bounds = array<i64: 1, 128>}, {pipeline_mode = #tpu.pipeline_mode<synchronous>, transform_indices = @transform_3, window_bounds = array<i64: 128, 128>}, {pipeline_mode = #tpu.pipeline_mode<synchronous>, transform_indices = @transform_4, window_bounds = array<i64: 1, 128>}, {pipeline_mode = #tpu.pipeline_mode<synchronous>, transform_indices = @transform_5, window_bounds = array<i64: 1, 128>}, {pipeline_mode = #tpu.pipeline_mode<synchronous>, transform_indices = @transform_6, window_bounds = array<i64: 1, 1>}, {transform_indices = @transform_7, window_bounds = array<i64: 8, 1>}]} {
    %c0 = arith.constant 0 : index
    %c0_0 = arith.constant 0 : index
    %0 = vector.load %arg1[%c0, %c0_0] : memref<128x5xi32, #tpu.memory_space<vmem>>, vector<128x5xi32>
    %1 = tpu.iota {dimensions = array<i32: 1>} : vector<128x128xi32>
    %2 = vector.extract_strided_slice %0 {offsets = [0, 0], sizes = [128, 1], strides = [1, 1]} : vector<128x5xi32> to vector<128x1xi32>
    %3 = vector.broadcast %2 : vector<128x1xi32> to vector<128x128xi32>
    %4 = arith.cmpi eq, %1, %3 : vector<128x128xi32>
    %5 = vector.extract_strided_slice %0 {offsets = [0, 1], sizes = [128, 1], strides = [1, 1]} : vector<128x5xi32> to vector<128x1xi32>
    %6 = vector.broadcast %5 : vector<128x1xi32> to vector<128x128xi32>
    %7 = arith.cmpi eq, %1, %6 : vector<128x128xi32>
    %8 = arith.ori %4, %7 : vector<128x128xi1>
    %9 = vector.extract_strided_slice %0 {offsets = [0, 2], sizes = [128, 1], strides = [1, 1]} : vector<128x5xi32> to vector<128x1xi32>
    %10 = vector.broadcast %9 : vector<128x1xi32> to vector<128x128xi32>
    %11 = arith.cmpi eq, %1, %10 : vector<128x128xi32>
    %12 = arith.ori %8, %11 : vector<128x128xi1>
    %13 = vector.extract_strided_slice %0 {offsets = [0, 3], sizes = [128, 1], strides = [1, 1]} : vector<128x5xi32> to vector<128x1xi32>
    %14 = vector.broadcast %13 : vector<128x1xi32> to vector<128x128xi32>
    %15 = arith.cmpi eq, %1, %14 : vector<128x128xi32>
    %16 = arith.ori %12, %15 : vector<128x128xi1>
    %17 = vector.extract_strided_slice %0 {offsets = [0, 4], sizes = [128, 1], strides = [1, 1]} : vector<128x5xi32> to vector<128x1xi32>
    %18 = vector.broadcast %17 : vector<128x1xi32> to vector<128x128xi32>
    %19 = arith.cmpi eq, %1, %18 : vector<128x128xi32>
    %20 = arith.ori %16, %19 : vector<128x128xi1>
    %21 = arith.extui %20 : vector<128x128xi1> to vector<128x128xi32>
    %22 = arith.sitofp %21 : vector<128x128xi32> to vector<128x128xf32>
    %23 = arith.truncf %22 : vector<128x128xf32> to vector<128x128xbf16>
    %c0_1 = arith.constant 0 : index
    %c0_2 = arith.constant 0 : index
    %24 = vector.load %arg2[%c0_1, %c0_2] : memref<128x128xbf16, #tpu.memory_space<vmem>>, vector<128x128xbf16>
    %cst = arith.constant dense<0.000000e+00> : vector<128x128xf32>
    %25 = tpu.matmul %23, %24, %cst {dimension_numbers = #tpu.dot_dimension_numbers<[1], [0], [0], [1], [0, 0, 1, 1], [], []>} : vector<128x128xbf16>, vector<128x128xbf16>, vector<128x128xf32> -> vector<128x128xf32>
    %c0_3 = arith.constant 0 : index
    %c0_4 = arith.constant 0 : index
    %26 = vector.load %arg3[%c0_3, %c0_4] : memref<1x128xf32, #tpu.memory_space<vmem>>, vector<1x128xf32>
    %27 = vector.broadcast %26 : vector<1x128xf32> to vector<128x128xf32>
    %28 = arith.addf %25, %27 : vector<128x128xf32>
    %29 = arith.truncf %28 : vector<128x128xf32> to vector<128x128xbf16>
    %c0_5 = arith.constant 0 : index
    %c0_6 = arith.constant 0 : index
    %30 = vector.load %arg4[%c0_5, %c0_6] : memref<128x128xbf16, #tpu.memory_space<vmem>>, vector<128x128xbf16>
    %cst_7 = arith.constant dense<0.000000e+00> : vector<128x128xf32>
    %31 = tpu.matmul %29, %30, %cst_7 {dimension_numbers = #tpu.dot_dimension_numbers<[1], [0], [0], [1], [0, 0, 1, 1], [], []>} : vector<128x128xbf16>, vector<128x128xbf16>, vector<128x128xf32> -> vector<128x128xf32>
    %c0_8 = arith.constant 0 : index
    %c0_9 = arith.constant 0 : index
    %32 = vector.load %arg5[%c0_8, %c0_9] : memref<1x128xf32, #tpu.memory_space<vmem>>, vector<1x128xf32>
    %33 = vector.broadcast %32 : vector<1x128xf32> to vector<128x128xf32>
    %34 = arith.addf %31, %33 : vector<128x128xf32>
    %cst_10 = arith.constant 0.000000e+00 : f32
    %35 = vector.broadcast %cst_10 : f32 to vector<128x128xf32>
    %36 = arith.maximumf %34, %35 : vector<128x128xf32>
    %37 = vector.shape_cast %36 : vector<128x128xf32> to vector<8x16x128xf32>
    %38 = tpu.iota {dimensions = array<i32: 1>} : vector<8x16x1xi32>
    %c12_i32 = arith.constant 12 : i32
    %39 = vector.broadcast %c12_i32 : i32 to vector<8x16x1xi32>
    %40 = arith.cmpi slt, %38, %39 : vector<8x16x1xi32>
    %cst_11 = arith.constant 0.000000e+00 : f32
    %41 = vector.shape_cast %40 : vector<8x16x1xi1> to vector<8x16x1xi1>
    %42 = vector.broadcast %41 : vector<8x16x1xi1> to vector<8x16x128xi1>
    %43 = vector.broadcast %cst_11 : f32 to vector<8x16x128xf32>
    %44 = arith.select %42, %37, %43 : vector<8x16x128xi1>, vector<8x16x128xf32>
    %cst_12 = arith.constant dense<0xFF800000> : vector<8x128xf32>
    %45 = vector.multi_reduction <maximumf>, %44, %cst_12 [1] : vector<8x16x128xf32> to vector<8x128xf32>
    %c0_13 = arith.constant 0 : index
    %c0_14 = arith.constant 0 : index
    %46 = vector.load %arg6[%c0_13, %c0_14] : memref<1x128xf32, #tpu.memory_space<vmem>>, vector<1x128xf32>
    %47 = vector.broadcast %46 : vector<1x128xf32> to vector<8x128xf32>
    %48 = arith.mulf %45, %47 : vector<8x128xf32>
    %cst_15 = arith.constant dense<0.000000e+00> : vector<8xf32>
    %49 = vector.multi_reduction <add>, %48, %cst_15 [1] : vector<8x128xf32> to vector<8xf32>
    %50 = vector.shape_cast %49 : vector<8xf32> to vector<8x1xf32>
    %c0_16 = arith.constant 0 : index
    %c0_17 = arith.constant 0 : index
    %51 = vector.load %arg7[%c0_16, %c0_17] : memref<1x1xf32, #tpu.memory_space<vmem>>, vector<1x1xf32>
    %52 = vector.broadcast %51 : vector<1x1xf32> to vector<8x1xf32>
    %53 = arith.addf %50, %52 : vector<8x1xf32>
    %c0_18 = arith.constant 0 : index
    %c0_19 = arith.constant 0 : index
    %54 = vector.load %arg8[%c0_18, %c0_19] : memref<8x1xf32, #tpu.memory_space<vmem>>, vector<8x1xf32>
    tpu.vector_store %arg8[%c0_18, %c0_19], %53 {strides = array<i32>} : memref<8x1xf32, #tpu.memory_space<vmem>>, vector<8x1xf32>,
    return
  }
  func.func @transform_0(%arg0: i32) -> (i32, i32) {
    %c0_i32 = arith.constant 0 : i32
    %c0_i32_0 = arith.constant 0 : i32
    return %arg0, %c0_i32 : i32, i32
  }
  func.func @transform_1(%arg0: i32) -> (i32, i32) {
    %c0_i32 = arith.constant 0 : i32
    %c0_i32_0 = arith.constant 0 : i32
    %c0_i32_1 = arith.constant 0 : i32
    return %c0_i32, %c0_i32_0 : i32, i32
  }
  func.func @transform_2(%arg0: i32) -> (i32, i32) {
    %c0_i32 = arith.constant 0 : i32
    %c0_i32_0 = arith.constant 0 : i32
    %c0_i32_1 = arith.constant 0 : i32
    return %c0_i32, %c0_i32_0 : i32, i32
  }
  func.func @transform_3(%arg0: i32) -> (i32, i32) {
    %c0_i32 = arith.constant 0 : i32
    %c0_i32_0 = arith.constant 0 : i32
    %c0_i32_1 = arith.constant 0 : i32
    return %c0_i32, %c0_i32_0 : i32, i32
  }
  func.func @transform_4(%arg0: i32) -> (i32, i32) {
    %c0_i32 = arith.constant 0 : i32
    %c0_i32_0 = arith.constant 0 : i32
    %c0_i32_1 = arith.constant 0 : i32
    return %c0_i32, %c0_i32_0 : i32, i32
  }
  func.func @transform_5(%arg0: i32) -> (i32, i32) {
    %c0_i32 = arith.constant 0 : i32
    %c0_i32_0 = arith.constant 0 : i32
    %c0_i32_1 = arith.constant 0 : i32
    return %c0_i32, %c0_i32_0 : i32, i32
  }
  func.func @transform_6(%arg0: i32) -> (i32, i32) {
    %c0_i32 = arith.constant 0 : i32
    %c0_i32_0 = arith.constant 0 : i32
    %c0_i32_1 = arith.constant 0 : i32
    return %c0_i32, %c0_i32_0 : i32, i32
  }
  func.func @transform_7(%arg0: i32) -> (i32, i32) {
    %c0_i32 = arith.constant 0 : i32
    %c0_i32_0 = arith.constant 0 : i32
    return %arg0, %c0_i32 : i32, i32
  }
}

</mosaic_0001>

<bundles_post_ra>
// kernel: tpu_custom_call.1
= control target key start
LH: loop header
LB: loop body
LE: loop exit
PB: predicated region body
PF: predicated region fallthrough
CT: control target
= control target key end

     0   :  { %v1160_v0 = vmov 4   ;;  %v1161_v1 = vmov 1   ;;  %v1162_v7 = vmov 0   ;;  %v1163_v9 = vmov 2   ;;  %s1735_s0 = inlined_call_operand.vmem [shape: s32[128,5], index: 0, kind: input, shape index: {}]   ;;  %s1736_s1 = inlined_call_operand.vmem [shape: bf16[128,128], index: 1, kind: input, shape index: {}]   ;;  %s1737_s3 = inlined_call_operand.vmem [shape: bf16[128,128], index: 3, kind: input, shape index: {}]   ;;  %s1738_s2 = inlined_call_operand.vmem [shape: f32[1,128], index: 2, kind: input, shape index: {}]   ;;  %s1739_s6 = inlined_call_operand.<no memory space> [shape: f32[1,1], index: 6, kind: input, shape index: {}]   ;;  %s1740_s4 = inlined_call_operand.vmem [shape: f32[1,128], index: 4, kind: input, shape index: {}]   ;;  %s1741_s5 = inlined_call_operand.vmem [shape: f32[1,128], index: 5, kind: input, shape index: {}]   ;;  %s1742_s7 = inlined_call_operand.vmem [shape: f32[8,1], index: 7, kind: output, shape index: {}]  }
   0x1   :  { %1117 = vset.pattern.permute.xlu0 %v1160_v0  ;;  %1111 = vset.pattern.permute.xlu1 %v1161_v1  ;;  %v30_v2 = vld [vmem:[%s1735_s0 + $0x8] sm:$0xff]  ;;  %v1214_v3 = vld [vmem:[%s1735_s0] sm:$0xff]  ;;  %v1226_v5 = vld [vmem:[%s1735_s0 + $0x38] sm:$0xff]  ;;  %v1164_v11 = vmov 3   ;;  %v45_v34 = vlaneseq  ;;  %v1747_v62 = vmov 0 }
   0x2   :  { %355 = vperm.xlu0 %1117, %v30_v2   ;;  %112 = vperm.xlu1 %1111, %v1214_v3   ;;  %v1220_v4 = vld [vmem:[%s1735_s0 + $0x20] sm:$0xff]  ;;  %v1231_v6 = vld [vmem:[%s1735_s0 + $0x18] sm:$0xff]  ;;  %v1239_v8 = vld [vmem:[%s1735_s0 + $0x48] sm:$0xff] }
   0x3   :  { %v31_v10 = vld [vmem:[%s1735_s0 + $0x10] sm:$0xff]  ;;  %v1264_v13 = vld [vmem:[%s1735_s0 + $0x60] sm:$0xff]  ;;  %v1273_v14 = vld [vmem:[%s1735_s0 + $0x28] sm:$0xff]  ;;  %v1374_v37 = vand.u32 127, %v45_v34 }
   0x4   :  { %v1258_v12 = vld [vmem:[%s1735_s0 + $0x50] sm:$0xff]  ;;  %v1288_v16 = vld [vmem:[%s1735_s0 + $0x68] sm:$0xff]  ;;  %v1144_v18 = vld [vmem:[%s1736_s1 + $0x38] sm:$0xff]  }
   0x5   :  { %v35_v15 = vld [vmem:[%s1735_s0 + $0x30] sm:$0xff]  ;;  %1041 = vmatprep.subr.bf16.mxu0 %v1144_v18  ;;  %v1146_v20 = vld [vmem:[%s1736_s1 + $0x28] sm:$0xff]   ;;  %v1147_v21 = vld [vmem:[%s1736_s1 + $0x20] sm:$0xff]  }
   0x6   :  { %364 = vperm.xlu0 %1117, %v1220_v4   ;;  %115 = vperm.xlu1 %1111, %v30_v2   ;;  %v1295_v17 = vld [vmem:[%s1735_s0 + $0x70] sm:$0xff]  ;;  %v1148_v22 = vld [vmem:[%s1736_s1 + $0x18] sm:$0xff]   ;;  %v1150_v25 = vld [vmem:[%s1736_s1 + $0x8] sm:$0xff]  }
   0x7   :  { %1042 = vmatpush3.bf16.msra.mxu0 %v1144_v18  ;;  %v1145_v19 = vld [vmem:[%s1736_s1 + $0x30] sm:$0xff]   ;;  %v1328_v23 = vld [vmem:[%s1735_s0 + $0x78] sm:$0xff]  ;;  %v1151_v26 = vld [vmem:[%s1736_s1] sm:$0xff]   ;;  %v1755_v18 = vmov 0 }
   0x8   :  { %1043 = vmatprep.subr.bf16.mxu0 %v1145_v19  ;;  %v1149_v24 = vld [vmem:[%s1736_s1 + $0x10] sm:$0xff]   ;;  %v37_v27 = vld [vmem:[%s1735_s0 + $0x40] sm:$0xff]  ;;  %v40_v28 = vld [vmem:[%s1735_s0 + $0x58] sm:$0xff] }
   0xa   :  { %373 = vperm.xlu0 %1117, %v1226_v5   ;;  %1112 = vset.pattern.permute.xlu1 %v1162_v7 }
   0xb   :  { %57 = vperm.xlu1 %1112, %v1231_v6   ;;  %1044 = vmatpush3.bf16.msra.mxu0 %v1145_v19 }
   0xc   :  { %1045 = vmatprep.subr.bf16.mxu0 %v1146_v20 }
   0xe   :  { %379 = vperm.xlu0 %1117, %v1239_v8  }
   0xf   :  { %1113 = vset.pattern.permute.xlu1 %v1161_v1  ;;  %1046 = vmatpush3.bf16.msra.mxu0 %v1146_v20 }
  0x10   :  { %121 = vperm.xlu1 %1113, %v1231_v6   ;;  %1047 = vmatprep.subr.bf16.mxu0 %v1147_v21 }
  0x12   :  { %1132 = vset.pattern.permute.xlu0 %v1162_v7 }
  0x13   :  { %48 = vperm.xlu0 %1132, %v1214_v3   ;;  %1048 = vmatpush3.bf16.msra.mxu0 %v1147_v21  ;;  %v12_v21 = vstv %s1739_s6 }
  0x14   :  { %1114 = vset.pattern.permute.xlu1 %v1163_v9  ;;  %1049 = vmatprep.subr.bf16.mxu0 %v1148_v22  ;;  %13 = vst [vmem:[#allocation2] sm:$0x1] %v12_v21 }
  0x15   :  { %192 = vperm.xlu1 %1114, %v1214_v3  }
  0x17   :  { %51 = vperm.xlu0 %1132, %v30_v2   ;;  %1050 = vmatpush3.bf16.msra.mxu0 %v1148_v22 }
  0x18   :  { %1051 = vmatprep.subr.bf16.mxu0 %v1149_v24 }
  0x19   :  { %198 = vperm.xlu1 %1114, %v31_v10  }
  0x1b   :  { %54 = vperm.xlu0 %1132, %v31_v10   ;;  %1052 = vmatpush3.bf16.msra.mxu0 %v1149_v24 }
  0x1c   :  { %1053 = vmatprep.subr.bf16.mxu0 %v1150_v25 }
  0x1d   :  { %201 = vperm.xlu1 %1114, %v1231_v6  }
  0x1f   :  { %60 = vperm.xlu0 %1132, %v1220_v4   ;;  %1054 = vmatpush3.bf16.msra.mxu0 %v1150_v25 }
  0x20   :  { %1055 = vmatprep.subr.bf16.mxu0 %v1151_v26 }
  0x21   :  { %1115 = vset.pattern.permute.xlu1 %v1164_v11 }
  0x22   :  { %275 = vperm.xlu1 %1115, %v30_v2  }
  0x23   :  { %75 = vperm.xlu0 %1132, %v1239_v8   ;;  %1056 = vmatpush3.bf16.msra.mxu0 %v1151_v26  ;;  %v1153_v26 = vld [vmem:[%s1737_s3 + $0x30] sm:$0xff]  }
  0x26   :  { %278 = vperm.xlu1 %1115, %v31_v10  }
  0x27   :  { %78 = vperm.xlu0 %1132, %v1258_v12  }
  0x2a   :  { %1116 = vset.pattern.permute.xlu1 %v1160_v0 }
  0x2b   :  { %84 = vperm.xlu0 %1132, %v1264_v13   ;;  %352 = vperm.xlu1 %1116, %v1214_v3  }
  0x2f   :  { %1133 = vset.pattern.permute.xlu0 %v1161_v1  ;;  %358 = vperm.xlu1 %1116, %v31_v10  }
  0x30   :  { %118 = vperm.xlu0 %1133, %v31_v10  }
  0x33   :  { %361 = vperm.xlu1 %1116, %v1231_v6  }
  0x34   :  { %127 = vperm.xlu0 %1133, %v1273_v14  }
  0x37   :  { %1118 = vset.pattern.permute.xlu1 %v1162_v7 }
  0x38   :  { %130 = vperm.xlu0 %1133, %v35_v15   ;;  %63 = vperm.xlu1 %1118, %v1273_v14  }
  0x3c   :  { %142 = vperm.xlu0 %1133, %v1258_v12   ;;  %1119 = vset.pattern.permute.xlu1 %v1161_v1 }
  0x3d   :  { %124 = vperm.xlu1 %1119, %v1220_v4  }
  0x40   :  { %151 = vperm.xlu0 %1133, %v1288_v16  }
  0x41   :  { %1120 = vset.pattern.permute.xlu1 %v1162_v7 }
  0x42   :  { %66 = vperm.xlu1 %1120, %v35_v15  }
  0x44   :  { %154 = vperm.xlu0 %1133, %v1295_v17  }
  0x46   :  { %69 = vperm.xlu1 %1120, %v1226_v5  }
  0x48   :  { %1137 = vset.pattern.permute.xlu0 %v1163_v9 }
  0x49   :  { %195 = vperm.xlu0 %1137, %v30_v2  }
  0x4a   :  { %1121 = vset.pattern.permute.xlu1 %v1161_v1 }
  0x4b   :  { %133 = vperm.xlu1 %1121, %v1226_v5  }
  0x4d   :  { %204 = vperm.xlu0 %1137, %v1220_v4  }
  0x4f   :  { %1122 = vset.pattern.permute.xlu1 %v1163_v9 }
  0x50   :  { %207 = vperm.xlu1 %1122, %v1273_v14  }
  0x51   :  { %213 = vperm.xlu0 %1137, %v1226_v5  }
  0x54   :  { %210 = vperm.xlu1 %1122, %v35_v15  }
  0x55   :  { %219 = vperm.xlu0 %1137, %v1239_v8  }
  0x58   :  { %1123 = vset.pattern.permute.xlu1 %v1164_v11 }
  0x59   :  { %228 = vperm.xlu0 %1137, %v1264_v13   ;;  %284 = vperm.xlu1 %1123, %v1220_v4  }
  0x5d   :  { %237 = vperm.xlu0 %1137, %v1328_v23   ;;  %290 = vperm.xlu1 %1123, %v35_v15  }
  0x61   :  { %1140 = vset.pattern.permute.xlu0 %v1164_v11  ;;  %293 = vperm.xlu1 %1123, %v1226_v5  }
  0x62   :  { %272 = vperm.xlu0 %1140, %v1214_v3  }
  0x65   :  { %1124 = vset.pattern.permute.xlu1 %v1160_v0 }
  0x66   :  { %281 = vperm.xlu0 %1140, %v1231_v6   ;;  %367 = vperm.xlu1 %1124, %v1273_v14  }
  0x6a   :  { %287 = vperm.xlu0 %1140, %v1273_v14   ;;  %370 = vperm.xlu1 %1124, %v35_v15  }
  0x6e   :  { %1125 = vset.pattern.permute.xlu1 %v1162_v7  ;;  %296 = vperm.xlu0 %1140, %v37_v27  }
  0x6f   :  { %72 = vperm.xlu1 %1125, %v37_v27  }
  0x72   :  { %305 = vperm.xlu0 %1140, %v40_v28  }
  0x73   :  { %1126 = vset.pattern.permute.xlu1 %v1161_v1 }
  0x74   :  { %136 = vperm.xlu1 %1126, %v37_v27  }
  0x76   :  { %311 = vperm.xlu0 %1140, %v1288_v16  }
  0x78   :  { %139 = vperm.xlu1 %1126, %v1239_v8  }
  0x7a   :  { %1142 = vset.pattern.permute.xlu0 %v1160_v0 }
  0x7b   :  { %388 = vperm.xlu0 %1142, %v1264_v13  }
  0x7c   :  { %1127 = vset.pattern.permute.xlu1 %v1162_v7 }
  0x7d   :  { %81 = vperm.xlu1 %1127, %v40_v28   ;;  %v1360_v29 = vpop.permute.xlu1 %112  ;;  %v1362_v30 = vpop.permute.xlu0 %355 }
  0x7e   :  { %vm400_vm10 = vcmp.eq.s32.totalorder %v1374_v37, %v1362_v30  ;;  %v1165_v30 = vmov 0.0  }
  0x7f   :  { %397 = vperm.xlu0 %1142, %v1328_v23  }
  0x81   :  { %1128 = vset.pattern.permute.xlu1 %v1161_v1  ;;  %v116_v31 = vpop.permute.xlu1 %115  ;;  %v1366_v32 = vpop.permute.xlu0 %364 }
  0x82   :  { %145 = vperm.xlu1 %1128, %v40_v28   ;;  %vm160_vm3 = vcmp.eq.s32.totalorder %v1374_v37, %v116_v31 }
  0x85   :  { %v1368_v33 = vpop.permute.xlu0 %373 }
  0x86   :  { %1129 = vset.pattern.permute.xlu1 %v1163_v9  ;;  %v58_v35 = vpop.permute.xlu1 %57 }
  0x87   :  { %216 = vperm.xlu1 %1129, %v37_v27   ;;  %vm98_vm0 = vcmp.eq.s32.totalorder %v1374_v37, %v58_v35 }
  0x89   :  { %v1371_v36 = vpop.permute.xlu0 %379 }
  0x8b   :  { %222 = vperm.xlu1 %1129, %v1258_v12   ;;  %v122_v38 = vpop.permute.xlu1 %121 }
  0x8c   :  { %vm162_vm1 = vcmp.eq.s32.totalorder %v1374_v37, %v122_v38  ;;  %v1154_v38 = vld [vmem:[%s1737_s3 + $0x28] sm:$0xff]  }
  0x8d   :  { %vm1379_vm2 = vmor %vm98_vm0, %vm162_vm1 }
  0x8e   :  { %v1383_v40 = vpop.permute.xlu0 %48 }
  0x8f   :  { %225 = vperm.xlu1 %1129, %v40_v28  }
  0x90   :  { %v1385_v41 = vpop.permute.xlu1 %192 }
  0x92   :  { %v52_v42 = vpop.permute.xlu0 %51 }
  0x93   :  { %vm96_vm4 = vcmp.eq.s32.totalorder %v1374_v37, %v52_v42  ;;  %1130 = vset.pattern.permute.xlu1 %v1164_v11 }
  0x94   :  { %vm1390_vm5 = vmor %vm96_vm4, %vm160_vm3  ;;  %299 = vperm.xlu1 %1130, %v1239_v8   ;;  %v199_v44 = vpop.permute.xlu1 %198  ;;  %vm95_vm3 = vcmp.eq.s32.totalorder %v1374_v37, %v1383_v40 }
  0x95   :  { %vm241_vm4 = vcmp.eq.s32.totalorder %v1374_v37, %v199_v44 }
  0x96   :  { %v55_v45 = vpop.permute.xlu0 %54 }
  0x97   :  { %vm97_vm15 = vcmp.eq.s32.totalorder %v1374_v37, %v55_v45  ;;  %v1155_v45 = vld [vmem:[%s1737_s3 + $0x20] sm:$0xff]  }
  0x98   :  { %302 = vperm.xlu1 %1130, %v1258_v12   ;;  %v1396_v46 = vpop.permute.xlu1 %201 }
  0x9a   :  { %v1398_v47 = vpop.permute.xlu0 %60 }
  0x9c   :  { %1131 = vset.pattern.permute.xlu1 %v1160_v0 }
  0x9d   :  { %376 = vperm.xlu1 %1131, %v37_v27   ;;  %v276_v48 = vpop.permute.xlu1 %275 }
  0x9e   :  { %v1401_v49 = vpop.permute.xlu0 %75  ;;  %vm320_vm11 = vcmp.eq.s32.totalorder %v1374_v37, %v276_v48 }
  0xa1   :  { %382 = vperm.xlu1 %1131, %v1258_v12   ;;  %v279_v50 = vpop.permute.xlu1 %278 }
  0xa2   :  { %v79_v51 = vpop.permute.xlu0 %78 }
  0xa3   :  { %vm105_vm6 = vcmp.eq.s32.totalorder %v1374_v37, %v79_v51 }
  0xa5   :  { %385 = vperm.xlu1 %1131, %v40_v28  }
  0xa6   :  { %v1404_v52 = vpop.permute.xlu1 %352  ;;  %v1406_v53 = vpop.permute.xlu0 %84 }
  0xa9   :  { %1134 = vset.pattern.permute.xlu1 %v1162_v7 }
  0xaa   :  { %87 = vperm.xlu1 %1134, %v1288_v16   ;;  %v1410_v54 = vpop.permute.xlu1 %358 }
  0xab   :  { %v119_v55 = vpop.permute.xlu0 %118 }
  0xac   :  { %vm161_vm0 = vcmp.eq.s32.totalorder %v1374_v37, %v119_v55 }
  0xad   :  { %vm177_vm1 = vmor %vm97_vm15, %vm161_vm0  ;;  %vm403_vm15 = vcmp.eq.s32.totalorder %v1374_v37, %v1366_v32 }
  0xae   :  { %1135 = vset.pattern.permute.xlu1 %v1161_v1  ;;  %v1413_v56 = vpop.permute.xlu1 %361 }
  0xaf   :  { %148 = vperm.xlu1 %1135, %v1264_v13   ;;  %v1416_v57 = vpop.permute.xlu0 %127 }
  0xb3   :  { %1136 = vset.pattern.permute.xlu1 %v1162_v7  ;;  %v1419_v58 = vpop.permute.xlu1 %63  ;;  %v1421_v59 = vpop.permute.xlu0 %130  ;;  %v1749_v7 = vmov 0 }
  0xb4   :  { %90 = vperm.xlu1 %1136, %v1295_v17  }
  0xb7   :  { %v143_v60 = vpop.permute.xlu0 %142 }
  0xb8   :  { %vm169_vm7 = vcmp.eq.s32.totalorder %v1374_v37, %v143_v60  ;;  %93 = vperm.xlu1 %1136, %v1328_v23   ;;  %v125_v61 = vpop.permute.xlu1 %124 }
  0xb9   :  { %vm1427_vm8 = vmor %vm105_vm6, %vm169_vm7  ;;  %vm159_vm6 = vcmp.eq.s32.totalorder %v1374_v37, %v1360_v29  ;;  %vm99_vm7 = vcmp.eq.s32.totalorder %v1374_v37, %v1398_v47 }
  0xba   :  { %v1748_v62 = vsel %vm1427_vm8, 4294967295, %v1747_v62 }
  0xbb   :  { %v1431_v63 = vpop.permute.xlu0 %151 }
  0xbc   :  { %1138 = vset.pattern.permute.xlu1 %v1161_v1 }
  0xbd   :  { %157 = vperm.xlu1 %1138, %v1328_v23   ;;  %v67_v2 = vpop.permute.xlu1 %66 }
  0xbf   :  { %v1435_v3 = vpop.permute.xlu0 %154 }
  0xc1   :  { %1139 = vset.pattern.permute.xlu1 %v1163_v9  ;;  %v1438_v4 = vpop.permute.xlu1 %69 }
  0xc2   :  { %231 = vperm.xlu1 %1139, %v1288_v16  }
  0xc4   :  { %v196_v5 = vpop.permute.xlu0 %195 }
  0xc5   :  { %vm240_vm9 = vcmp.eq.s32.totalorder %v1374_v37, %v196_v5 }
  0xc6   :  { %vm256_vm12 = vmor %vm1390_vm5, %vm240_vm9  ;;  %234 = vperm.xlu1 %1139, %v1295_v17   ;;  %v134_v1 = vpop.permute.xlu1 %133  ;;  %vm163_vm9 = vcmp.eq.s32.totalorder %v1374_v37, %v125_v61 }
  0xc7   :  { %vm336_vm13 = vmor %vm256_vm12, %vm320_vm11  ;;  %vm321_vm11 = vcmp.eq.s32.totalorder %v1374_v37, %v279_v50 }
  0xc8   :  { %v205_v6 = vpop.permute.xlu0 %204  ;;  %vm1448_vm14 = vmor %vm336_vm13, %vm400_vm10 }
  0xc9   :  { %v1750_v7 = vsel %vm1448_vm14, 4294967295, %v1749_v7  ;;  %vm257_vm5 = vmor %vm177_vm1, %vm241_vm4  ;;  %vm243_vm12 = vcmp.eq.s32.totalorder %v1374_v37, %v205_v6  ;;  %vm239_vm4 = vcmp.eq.s32.totalorder %v1374_v37, %v1385_v41 }
  0xca   :  { %1141 = vset.pattern.permute.xlu1 %v1164_v11  ;;  %vm1467_vm10 = vmor %vm95_vm3, %vm159_vm6 }
  0xcb   :  { %308 = vperm.xlu1 %1141, %v1264_v13   ;;  %v208_v8 = vpop.permute.xlu1 %207  ;;  %vm1473_vm13 = vmor %vm257_vm5, %vm321_vm11  ;;  %vm242_vm5 = vcmp.eq.s32.totalorder %v1374_v37, %v1396_v46 }
  0xcc   :  { %v214_v9 = vpop.permute.xlu0 %213  ;;  %vm179_vm0 = vmor %vm99_vm7, %vm163_vm9  ;;  %vm164_vm7 = vcmp.eq.s32.totalorder %v1374_v37, %v1416_v57  ;;  %vm100_vm9 = vcmp.eq.s32.totalorder %v1374_v37, %v1419_v58  ;;  %vm244_vm8 = vcmp.eq.s32.totalorder %v1374_v37, %v208_v8 }
  0xcd   :  { %vm259_vm1 = vmor %vm179_vm0, %vm243_vm12  ;;  %vm165_vm0 = vcmp.eq.s32.totalorder %v1374_v37, %v1421_v59 }
  0xce   :  { %vm1501_vm12 = vmor %vm1467_vm10, %vm239_vm4  ;;  %vm166_vm4 = vcmp.eq.s32.totalorder %v1374_v37, %v134_v1 }
  0xcf   :  { %314 = vperm.xlu1 %1141, %v1295_v17   ;;  %v211_v10 = vpop.permute.xlu1 %210 }
  0xd0   :  { %v1460_v12 = vpop.permute.xlu0 %219 }
  0xd3   :  { %317 = vperm.xlu1 %1141, %v1328_v23  }
  0xd4   :  { %v285_v14 = vpop.permute.xlu1 %284  ;;  %v1480_v15 = vpop.permute.xlu0 %228 }
  0xd5   :  { %vm323_vm3 = vcmp.eq.s32.totalorder %v1374_v37, %v285_v14  ;;  %v1157_v14 = vld [vmem:[%s1737_s3 + $0x10] sm:$0xff]  }
  0xd6   :  { %vm339_vm6 = vmor %vm259_vm1, %vm323_vm3  ;;  %vm101_vm1 = vcmp.eq.s32.totalorder %v1374_v37, %v67_v2 }
  0xd7   :  { %vm1487_vm11 = vmor %vm339_vm6, %vm403_vm15  ;;  %1143 = vset.pattern.permute.xlu1 %v1160_v0  ;;  %vm401_vm15 = vcmp.eq.s32.totalorder %v1374_v37, %v1410_v54 }
  0xd8   :  { %v1756_v18 = vsel %vm1487_vm11, 4294967295, %v1755_v18  ;;  %391 = vperm.xlu1 %1143, %v1288_v16   ;;  %v291_v19 = vpop.permute.xlu1 %290  ;;  %v1497_v20 = vpop.permute.xlu0 %237  ;;  %vm1512_vm3 = vmor %vm1379_vm2, %vm242_vm5  ;;  %vm246_vm11 = vcmp.eq.s32.totalorder %v1374_v37, %v214_v9  ;;  %vm102_vm2 = vcmp.eq.s32.totalorder %v1374_v37, %v1438_v4  ;;  %vm245_vm5 = vcmp.eq.s32.totalorder %v1374_v37, %v211_v10 }
  0xd9   :  { %vm1518_vm10 = vmor %vm1473_vm13, %vm401_vm15 }
  0xda   :  { %vm180_vm6 = vmor %vm100_vm9, %vm164_vm7  ;;  %v975_v43 = vsel %vm1518_vm10, 1.0, %v1165_v30  ;;  %vm406_vm10 = vcmp.eq.s32.totalorder %v1374_v37, %v1368_v33  ;;  %v1156_v33 = vld [vmem:[%s1737_s3 + $0x18] sm:$0xff]  }
  0xdb   :  { %vm181_vm14 = vmor %vm101_vm1, %vm165_vm0  ;;  %vm325_vm1 = vcmp.eq.s32.totalorder %v1374_v37, %v291_v19  ;;  %v1158_v19 = vld [vmem:[%s1737_s3 + $0x8] sm:$0xff]  }
  0xdc   :  { %394 = vperm.xlu1 %1143, %v1295_v17   ;;  %v294_v22 = vpop.permute.xlu1 %293  ;;  %vm182_vm13 = vmor %vm102_vm2, %vm166_vm4  ;;  %v1152_v17 = vld [vmem:[%s1737_s3 + $0x38] sm:$0xff]   ;;  %vm399_vm4 = vcmp.eq.s32.totalorder %v1374_v37, %v1404_v52 }
  0xdd   :  { %v273_v23 = vpop.permute.xlu0 %272  ;;  %vm1529_vm15 = vmor %vm180_vm6, %vm244_vm8  ;;  %1073 = vmatprep.subr.bf16.mxu1 %v1152_v17  ;;  %vm326_vm6 = vcmp.eq.s32.totalorder %v1374_v37, %v294_v22 }
  0xde   :  { %vm1533_vm7 = vmor %vm182_vm13, %vm246_vm11  ;;  %vm319_vm9 = vcmp.eq.s32.totalorder %v1374_v37, %v273_v23  ;;  %1074 = vmatpush3.bf16.msra.mxu1 %v1152_v17 }
  0xdf   :  { %vm261_vm0 = vmor %vm181_vm14, %vm245_vm5  ;;  %vm402_vm5 = vcmp.eq.s32.totalorder %v1374_v37, %v1413_v56  ;;  %1075 = vmatprep.subr.bf16.mxu1 %v1153_v26 }
  0xe0   :  { %vm335_vm8 = vmor %vm1501_vm12, %vm319_vm9  ;;  %vm1769_vm12 = vnez %v1750_v7 }
  0xe1   :  { %v282_v27 = vpop.permute.xlu0 %281  ;;  %v368_v28 = vpop.permute.xlu1 %367  ;;  %vm415_vm11 = vmor %vm335_vm8, %vm399_vm4  ;;  %v974_v32 = vsel %vm1769_vm12, 1.0, %v1165_v30 }
  0xe2   :  { %vm1549_vm14 = vmor %vm261_vm0, %vm325_vm1  ;;  %vm322_vm2 = vcmp.eq.s32.totalorder %v1374_v37, %v282_v27  ;;  %v973_v31 = vsel %vm415_vm11, 1.0, %v1165_v30  ;;  %1076 = vmatpush3.bf16.msra.mxu1 %v1153_v26  ;;  %vm1772_vm11 = vnez %v1756_v18  ;;  %v1778_v26 = vmov 0 }
  0xe3   :  { %vm338_vm13 = vmor %vm1512_vm3, %vm322_vm2  ;;  %v463_v35 = vpack.c.bf16 %v974_v32, %v973_v31  ;;  %1077 = vmatprep.subr.bf16.mxu1 %v1154_v38  ;;  %v977_v46 = vsel %vm1772_vm11, 1.0, %v1165_v30  ;;  %vm104_vm2 = vcmp.eq.s32.totalorder %v1374_v37, %v1401_v49 }
  0xe4   :  { %vm418_vm9 = vmor %vm338_vm13, %vm402_vm5 }
  0xe5   :  { %vm1568_vm0 = vmor %vm1533_vm7, %vm326_vm6  ;;  %v976_v40 = vsel %vm418_vm9, 1.0, %v1165_v30  ;;  %1057 = vmatprep.mubr.bf16.mxu0 %v463_v35  ;;  %v288_v41 = vpop.permute.xlu0 %287  ;;  %v371_v42 = vpop.permute.xlu1 %370  ;;  %vm404_vm7 = vcmp.eq.s32.totalorder %v1374_v37, %v368_v28 }
  0xe6   :  { %vm324_vm3 = vcmp.eq.s32.totalorder %v1374_v37, %v288_v41  ;;  %vm405_vm1 = vcmp.eq.s32.totalorder %v1374_v37, %v371_v42  ;;  %v464_v44 = vpack.c.bf16 %v976_v40, %v975_v43  ;;  %1078 = vmatpush3.bf16.msra.mxu1 %v1154_v38  ;;  %v989_v43 = vld [vmem:[%s1738_s2] ss:$0 sm:$0xff] }
  0xe7   :  { %vm340_vm4 = vmor %vm1529_vm15, %vm324_vm3  ;;  %1079 = vmatprep.subr.bf16.mxu1 %v1155_v45 }
  0xe8   :  { %vm420_vm8 = vmor %vm340_vm4, %vm404_vm7  ;;  %1058 = vmatmul.mubr.bf16.vlgmr.msra.gmra.mxu0 %v464_v44 }
  0xe9   :  { %v978_v47 = vsel %vm420_vm8, 1.0, %v1165_v30  ;;  %vm421_vm6 = vmor %vm1549_vm14, %vm405_vm1  ;;  %vm248_vm14 = vcmp.eq.s32.totalorder %v1374_v37, %v1460_v12  ;;  %v297_v4 = vpop.permute.xlu0 %296 }
  0xea   :  { %vm422_vm15 = vmor %vm1568_vm0, %vm406_vm10  ;;  %v73_v48 = vpop.permute.xlu1 %72  ;;  %v465_v50 = vpack.c.bf16 %v978_v47, %v977_v46  ;;  %v979_v51 = vsel %vm421_vm6, 1.0, %v1165_v30  ;;  %1080 = vmatpush3.bf16.msra.mxu1 %v1155_v45  ;;  %vm408_vm0 = vcmp.eq.s32.totalorder %v1374_v37, %v1371_v36  ;;  %vm327_vm6 = vcmp.eq.s32.totalorder %v1374_v37, %v297_v4 }
  0xeb   :  { %v980_v52 = vsel %vm422_vm15, 1.0, %v1165_v30  ;;  %1081 = vmatprep.subr.bf16.mxu1 %v1156_v33  ;;  %vm103_vm8 = vcmp.eq.s32.totalorder %v1374_v37, %v73_v48 }
  0xec   :  { %1061 = vmatprep.mubr.bf16.mxu0 %v465_v50  ;;  %v466_v54 = vpack.c.bf16 %v980_v52, %v979_v51 }
  0xed   :  { %v306_v36 = vpop.permute.xlu0 %305 }
  0xee   :  { %1082 = vmatpush3.bf16.msra.mxu1 %v1156_v33 }
  0xef   :  { %v137_v55 = vpop.permute.xlu1 %136  ;;  %1083 = vmatprep.subr.bf16.mxu1 %v1157_v14 }
  0xf0   :  { %1062 = vmatmul.mubr.bf16.gmra.mxu0 %v466_v54  ;;  %vm167_vm1 = vcmp.eq.s32.totalorder %v1374_v37, %v137_v55 }
  0xf1   :  { %vm183_vm10 = vmor %vm103_vm8, %vm167_vm1  ;;  %vm1775_vm1 = vnez %v1748_v62  ;;  %v312_v25 = vpop.permute.xlu0 %311 }
  0xf2   :  { %1084 = vmatpush3.bf16.msra.mxu1 %v1157_v14 }
  0xf3   :  { %v140_v56 = vpop.permute.xlu1 %139  ;;  %1085 = vmatprep.subr.bf16.mxu1 %v1158_v19 }
  0xf4   :  { %vm168_vm12 = vcmp.eq.s32.totalorder %v1374_v37, %v140_v56 }
  0xf5   :  { %vm184_vm5 = vmor %vm104_vm2, %vm168_vm12 }
  0xf6   :  { %vm264_vm13 = vmor %vm184_vm5, %vm248_vm14  ;;  %1086 = vmatpush3.bf16.msra.mxu1 %v1158_v19  ;;  %v389_v27 = vpop.permute.xlu0 %388 }
  0xf8   :  { %v82_v57 = vpop.permute.xlu1 %81 }
  0xfd   :  { %v146_v58 = vpop.permute.xlu1 %145 }
  0xfe   :  { %vm170_vm15 = vcmp.eq.s32.totalorder %v1374_v37, %v146_v58 }
 0x102   :  { %v217_v59 = vpop.permute.xlu1 %216 }
 0x103   :  { %vm247_vm4 = vcmp.eq.s32.totalorder %v1374_v37, %v217_v59 }
 0x104   :  { %vm263_vm11 = vmor %vm183_vm10, %vm247_vm4 }
 0x105   :  { %vm343_vm14 = vmor %vm263_vm11, %vm327_vm6  ;;  %vm330_vm11 = vcmp.eq.s32.totalorder %v1374_v37, %v306_v36 }
 0x106   :  { %v223_v60 = vpop.permute.xlu1 %222 }
 0x107   :  { %vm249_vm12 = vcmp.eq.s32.totalorder %v1374_v37, %v223_v60 }
 0x108   :  { %vm265_vm4 = vmor %vm1775_vm1, %vm249_vm12  ;;  %vm107_vm12 = vcmp.eq.s32.totalorder %v1374_v37, %v1406_v53  ;;  %v1159_v53 = vld [vmem:[%s1737_s3] sm:$0xff]  }
 0x109   :  { %1087 = vmatprep.subr.bf16.mxu1 %v1159_v53 }
 0x10a   :  { %v226_v61 = vpop.permute.xlu1 %225  ;;  %1088 = vmatpush3.bf16.msra.mxu1 %v1159_v53 }
 0x10f   :  { %v300_v2 = vpop.permute.xlu1 %299 }
 0x110   :  { %vm328_vm9 = vcmp.eq.s32.totalorder %v1374_v37, %v300_v2 }
 0x111   :  { %vm344_vm3 = vmor %vm264_vm13, %vm328_vm9  ;;  %vm106_vm13 = vcmp.eq.s32.totalorder %v1374_v37, %v82_v57  ;;  %vm250_vm9 = vcmp.eq.s32.totalorder %v1374_v37, %v226_v61 }
 0x112   :  { %vm1608_vm7 = vmor %vm344_vm3, %vm408_vm0 }
 0x113   :  { %v303_v5 = vpop.permute.xlu1 %302  ;;  %v982_v6 = vsel %vm1608_vm7, 1.0, %v1165_v30  ;;  %vm186_vm0 = vmor %vm106_vm13, %vm170_vm15  ;;  %vm251_vm13 = vcmp.eq.s32.totalorder %v1374_v37, %v1480_v15 }
 0x114   :  { %vm329_vm3 = vcmp.eq.s32.totalorder %v1374_v37, %v303_v5  ;;  %vm266_vm10 = vmor %vm186_vm0, %vm250_vm9 }
 0x115   :  { %vm345_vm6 = vmor %vm265_vm4, %vm329_vm3  ;;  %vm172_vm4 = vcmp.eq.s32.totalorder %v1374_v37, %v1431_v63  ;;  %v398_v63 = vpop.permute.xlu0 %397 }
 0x116   :  { %vm346_vm7 = vmor %vm266_vm10, %vm330_vm11  ;;  %vm173_vm10 = vcmp.eq.s32.totalorder %v1374_v37, %v1435_v3 }
 0x118   :  { %v377_v1 = vpop.permute.xlu1 %376 }
 0x119   :  { %vm407_vm2 = vcmp.eq.s32.totalorder %v1374_v37, %v377_v1 }
 0x11a   :  { %vm423_vm5 = vmor %vm343_vm14, %vm407_vm2 }
 0x11b   :  { %v981_v7 = vsel %vm423_vm5, 1.0, %v1165_v30 }
 0x11c   :  { %v467_v8 = vpack.c.bf16 %v982_v6, %v981_v7  ;;  %v383_v9 = vpop.permute.xlu1 %382 }
 0x11d   :  { %vm409_vm8 = vcmp.eq.s32.totalorder %v1374_v37, %v383_v9 }
 0x11e   :  { %1065 = vmatprep.mubr.bf16.mxu0 %v467_v8  ;;  %vm425_vm14 = vmor %vm345_vm6, %vm409_vm8 }
 0x11f   :  { %v983_v12 = vsel %vm425_vm14, 1.0, %v1165_v30 }
 0x120   :  { %v386_v10 = vpop.permute.xlu1 %385 }
 0x121   :  { %vm410_vm2 = vcmp.eq.s32.totalorder %v1374_v37, %v386_v10 }
 0x122   :  { %vm426_vm15 = vmor %vm346_vm7, %vm410_vm2 }
 0x123   :  { %v984_v11 = vsel %vm426_vm15, 1.0, %v1165_v30 }
 0x124   :  { %v468_v13 = vpack.c.bf16 %v984_v11, %v983_v12 }
 0x125   :  { %v88_v62 = vpop.permute.xlu1 %87 }
 0x126   :  { %1066 = vmatmul.mubr.bf16.gmra.mxu0 %v468_v13  ;;  %vm108_vm3 = vcmp.eq.s32.totalorder %v1374_v37, %v88_v62 }
 0x127   :  { %vm188_vm11 = vmor %vm108_vm3, %vm172_vm4  ;;  %vm332_vm3 = vcmp.eq.s32.totalorder %v1374_v37, %v312_v25 }
 0x12a   :  { %v149_v18 = vpop.permute.xlu1 %148 }
 0x12b   :  { %vm171_vm5 = vcmp.eq.s32.totalorder %v1374_v37, %v149_v18 }
 0x12c   :  { %vm187_vm9 = vmor %vm107_vm12, %vm171_vm5  ;;  %vm254_vm5 = vcmp.eq.s32.totalorder %v1374_v37, %v1497_v20 }
 0x12d   :  { %vm1643_vm0 = vmor %vm187_vm9, %vm251_vm13  ;;  %vm411_vm9 = vcmp.eq.s32.totalorder %v1374_v37, %v389_v27  ;;  %v832_v27 = vshrl.u32 %v45_v34, 7 }
 0x12f   :  { %v91_v0 = vpop.permute.xlu1 %90 }
 0x130   :  { %vm109_vm1 = vcmp.eq.s32.totalorder %v1374_v37, %v91_v0 }
 0x131   :  { %vm1658_vm14 = vmor %vm109_vm1, %vm173_vm10 }
 0x132   :  { %v1779_v26 = vsel %vm1658_vm14, 4294967295, %v1778_v26 }
 0x133   :  { %v94_v16 = vpop.permute.xlu1 %93 }
 0x134   :  { %vm110_vm7 = vcmp.eq.s32.totalorder %v1374_v37, %v94_v16 }
 0x138   :  { %v158_v15 = vpop.permute.xlu1 %157 }
 0x139   :  { %vm174_vm8 = vcmp.eq.s32.totalorder %v1374_v37, %v158_v15 }
 0x13a   :  { %vm190_vm15 = vmor %vm110_vm7, %vm174_vm8 }
 0x13b   :  { %vm270_vm1 = vmor %vm190_vm15, %vm254_vm5  ;;  %vm1780_vm5 = vnez %v1779_v26 }
 0x13d   :  { %v232_v22 = vpop.permute.xlu1 %231 }
 0x13e   :  { %vm252_vm6 = vcmp.eq.s32.totalorder %v1374_v37, %v232_v22 }
 0x13f   :  { %vm268_vm12 = vmor %vm188_vm11, %vm252_vm6  ;;  %vm414_vm6 = vcmp.eq.s32.totalorder %v1374_v37, %v398_v63  ;;  %v1692_v63 = vld [vmem:[%s1740_s4] ss:$0 sm:$0xff] }
 0x140   :  { %vm348_vm10 = vmor %vm268_vm12, %vm332_vm3 }
 0x141   :  { %v235_v23 = vpop.permute.xlu1 %234 }
 0x142   :  { %vm253_vm14 = vcmp.eq.s32.totalorder %v1374_v37, %v235_v23 }
 0x143   :  { %vm269_vm15 = vmor %vm1780_vm5, %vm253_vm14 }
 0x146   :  { %v309_v24 = vpop.permute.xlu1 %308 }
 0x147   :  { %vm331_vm2 = vcmp.eq.s32.totalorder %v1374_v37, %v309_v24 }
 0x148   :  { %vm347_vm13 = vmor %vm1643_vm0, %vm331_vm2 }
 0x149   :  { %vm427_vm8 = vmor %vm347_vm13, %vm411_vm9 }
 0x14a   :  { %v315_v17 = vpop.permute.xlu1 %314  ;;  %v985_v20 = vsel %vm427_vm8, 1.0, %v1165_v30  ;;  %vm945_vm8 = vcmask 1044484  }
 0x14b   :  { %vm333_vm0 = vcmp.eq.s32.totalorder %v1374_v37, %v315_v17 }
 0x14c   :  { %vm349_vm13 = vmor %vm269_vm15, %vm333_vm0  ;;  %vm967_vm0 = vcmask 7168  }
 0x14e   :  { %v318_v28 = vpop.permute.xlu1 %317 }
 0x14f   :  { %vm334_vm4 = vcmp.eq.s32.totalorder %v1374_v37, %v318_v28 }
 0x150   :  { %vm350_vm11 = vmor %vm270_vm1, %vm334_vm4  ;;  %vm936_vm1 = vcmask 1041409   ;;  %vm939_vm4 = vcmask 1042434  }
 0x151   :  { %vm430_vm12 = vmor %vm350_vm11, %vm414_vm6  ;;  %vm948_vm11 = vcmask 1045509   ;;  %vm951_vm6 = vcmask 1046534  }
 0x152   :  { %v988_v35 = vsel %vm430_vm12, 1.0, %v1165_v30 }
 0x153   :  { %v392_v3 = vpop.permute.xlu1 %391 }
 0x154   :  { %vm412_vm7 = vcmp.eq.s32.totalorder %v1374_v37, %v392_v3 }
 0x155   :  { %vm428_vm2 = vmor %vm348_vm10, %vm412_vm7  ;;  %vm942_vm10 = vcmask 1043459   ;;  %vm954_vm7 = vcmask 1047559  }
 0x156   :  { %v986_v29 = vsel %vm428_vm2, 1.0, %v1165_v30 }
 0x157   :  { %v469_v31 = vpack.c.bf16 %v986_v29, %v985_v20  ;;  %v395_v32 = vpop.permute.xlu1 %394  ;;  %v1695_v20 = vadd.s32 8, %v832_v27 }
 0x158   :  { %vm413_vm9 = vcmp.eq.s32.totalorder %v1374_v37, %v395_v32 }
 0x159   :  { %vm429_vm3 = vmor %vm349_vm13, %vm413_vm9  ;;  %1069 = vmatprep.mubr.bf16.mxu0 %v469_v31  ;;  %vm835_vm14 = vcmp.lt.s32.totalorder %v1695_v20, 12 }
 0x15a   :  { %v987_v38 = vsel %vm429_vm3, 1.0, %v1165_v30 }
 0x15b   :  { %v470_v39 = vpack.c.bf16 %v988_v35, %v987_v38 }
 0x15d   :  { %1070 = vmatmul.mubr.bf16.gmra.mxu0 %v470_v39 }
 0x1a8   :  { %v1059_v40 = vpop.f32.mrf.mxu0 }
 0x1a9   :  { %v585_v37 = vadd.f32 %v1059_v40, %v989_v43 }
 0x1aa   :  { %v576_v41 = vpop.f32.mrf.mxu0 }
 0x1ab   :  { %v577_v46 = vadd.f32 %v989_v43, %v576_v41 }
 0x1ac   :  { %v1060_v42 = vpop.f32.mrf.mxu0 }
 0x1ad   :  { %v588_v44 = vadd.f32 %v1060_v42, %v989_v43 }
 0x1ae   :  { %v579_v45 = vpop.f32.mrf.mxu0 }
 0x1af   :  { %v580_v47 = vadd.f32 %v989_v43, %v579_v45  ;;  %v640_v51 = vpack.c.bf16 %v588_v44, %v585_v37 }
 0x1b0   :  { %v1063_v48 = vpop.f32.mrf.mxu0 }
 0x1b1   :  { %v639_v50 = vpack.c.bf16 %v580_v47, %v577_v46  ;;  %v601_v57 = vadd.f32 %v1063_v48, %v989_v43 }
 0x1b2   :  { %v592_v33 = vpop.f32.mrf.mxu0 }
 0x1b3   :  { %1089 = vmatprep.mubr.bf16.mxu1 %v639_v50  ;;  %v593_v55 = vadd.f32 %v989_v43, %v592_v33 }
 0x1b4   :  { %v1064_v30 = vpop.f32.mrf.mxu0  ;;  %1090 = vmatmul.mubr.bf16.vlgmr.msra.gmra.mxu1 %v640_v51 }
 0x1b5   :  { %v604_v52 = vadd.f32 %v1064_v30, %v989_v43 }
 0x1b6   :  { %v595_v54 = vpop.f32.mrf.mxu0 }
 0x1b7   :  { %v596_v56 = vadd.f32 %v989_v43, %v595_v54  ;;  %v642_v59 = vpack.c.bf16 %v604_v52, %v601_v57 }
 0x1b9   :  { %v641_v58 = vpack.c.bf16 %v596_v56, %v593_v55 }
 0x1bb   :  { %1093 = vmatprep.mubr.bf16.mxu1 %v641_v58 }
 0x1bc   :  { %1094 = vmatmul.mubr.bf16.gmra.mxu1 %v642_v59 }
 0x1e6   :  { %v1067_v60 = vpop.f32.mrf.mxu0 }
 0x1e7   :  { %v617_v36 = vadd.f32 %v1067_v60, %v989_v43 }
 0x1e8   :  { %v608_v61 = vpop.f32.mrf.mxu0 }
 0x1e9   :  { %v609_v5 = vadd.f32 %v989_v43, %v608_v61 }
 0x1ea   :  { %v1068_v2 = vpop.f32.mrf.mxu0 }
 0x1eb   :  { %v620_v49 = vadd.f32 %v1068_v2, %v989_v43 }
 0x1ec   :  { %v611_v4 = vpop.f32.mrf.mxu0 }
 0x1ed   :  { %v612_v1 = vadd.f32 %v989_v43, %v611_v4  ;;  %v644_v7 = vpack.c.bf16 %v620_v49, %v617_v36 }
 0x1ef   :  { %v643_v6 = vpack.c.bf16 %v612_v1, %v609_v5 }
 0x1f1   :  { %1097 = vmatprep.mubr.bf16.mxu1 %v643_v6 }
 0x1f2   :  { %1098 = vmatmul.mubr.bf16.gmra.mxu1 %v644_v7 }
 0x21d   :  { %v1071_v8 = vpop.f32.mrf.mxu0 }
 0x21e   :  { %v633_v14 = vadd.f32 %v1071_v8, %v989_v43 }
 0x21f   :  { %v624_v9 = vpop.f32.mrf.mxu0 }
 0x220   :  { %v625_v13 = vadd.f32 %v989_v43, %v624_v9 }
 0x221   :  { %v1072_v10 = vpop.f32.mrf.mxu0 }
 0x222   :  { %v636_v12 = vadd.f32 %v1072_v10, %v989_v43 }
 0x223   :  { %v627_v11 = vpop.f32.mrf.mxu0 }
 0x224   :  { %v628_v62 = vadd.f32 %v989_v43, %v627_v11  ;;  %v646_v19 = vpack.c.bf16 %v636_v12, %v633_v14 }
 0x226   :  { %v645_v18 = vpack.c.bf16 %v628_v62, %v625_v13 }
 0x228   :  { %1101 = vmatprep.mubr.bf16.mxu1 %v645_v18 }
 0x229   :  { %1102 = vmatmul.mubr.bf16.gmra.mxu1 %v646_v19 }
 0x274   :  { %v1091_v0 = vpop.f32.mrf.mxu1 }
 0x275   :  { %v761_v38 = vadd.f32 %v1091_v0, %v1692_v63 }
 0x276   :  { %v752_v53 = vpop.f32.mrf.mxu1 }
 0x277   :  { %v817_v44 = vmax.f32 %v761_v38, 0.0  ;;  %v753_v45 = vadd.f32 %v1692_v63, %v752_v53 }
 0x278   :  { %v1092_v16 = vpop.f32.mrf.mxu1 }
 0x279   :  { %v764_v3 = vadd.f32 %v1092_v16, %v1692_v63  ;;  %v815_v55 = vmax.f32 %v753_v45, 0.0 }
 0x27a   :  { %v755_v15 = vpop.f32.mrf.mxu1 }
 0x27b   :  { %v818_v32 = vmax.f32 %v764_v3, 0.0  ;;  %v756_v35 = vadd.f32 %v1692_v63, %v755_v15 }
 0x27c   :  { %v1095_v22 = vpop.f32.mrf.mxu1 }
 0x27d   :  { %v843_v42 = vsel %vm835_vm14, %v818_v32, 0.0  ;;  %v816_v43 = vmax.f32 %v756_v35, 0.0  ;;  %v777_v30 = vadd.f32 %v1095_v22, %v1692_v63 }
 0x27e   :  { %v768_v23 = vpop.f32.mrf.mxu1  ;;  %v863_v33 = vmax.f32 %v817_v44, %v843_v42 }
 0x27f   :  { %v769_v40 = vadd.f32 %v1692_v63, %v768_v23  ;;  %v841_v52 = vsel %vm835_vm14, %v816_v43, 0.0  ;;  %v821_v2 = vmax.f32 %v777_v30, 0.0 }
 0x280   :  { %v1096_v24 = vpop.f32.mrf.mxu1  ;;  %v864_v60 = vrot.slane %v863_v33, 4  ;;  %v856_v61 = vmax.f32 %v815_v55, %v841_v52 }
 0x281   :  { %v780_v41 = vadd.f32 %v1096_v24, %v1692_v63  ;;  %v819_v37 = vmax.f32 %v769_v40, 0.0 }
 0x282   :  { %v771_v25 = vpop.f32.mrf.mxu1  ;;  %v865_v6 = vmax.f32 %v863_v33, %v864_v60  ;;  %v857_v7 = vrot.slane %v856_v61, 4 }
 0x283   :  { %v772_v29 = vadd.f32 %v1692_v63, %v771_v25  ;;  %v822_v48 = vmax.f32 %v780_v41, 0.0 }
 0x284   :  { %v866_v13 = vrot.slane %v865_v6, 2  ;;  %v858_v62 = vmax.f32 %v856_v61, %v857_v7 }
 0x285   :  { %v820_v34 = vmax.f32 %v772_v29, 0.0  ;;  %v847_v57 = vsel %vm835_vm14, %v822_v48, 0.0 }
 0x286   :  { %v877_v1 = vmax.f32 %v821_v2, %v847_v57  ;;  %v867_v53 = vmax.f32 %v865_v6, %v866_v13  ;;  %v859_v16 = vrot.slane %v858_v62, 2 }
 0x287   :  { %v845_v46 = vsel %vm835_vm14, %v820_v34, 0.0 }
 0x288   :  { %v870_v54 = vmax.f32 %v819_v37, %v845_v46  ;;  %v878_v12 = vrot.slane %v877_v1, 4  ;;  %v868_v27 = vrot.slane %v867_v53, 1  ;;  %v1007_v46 = vld [vmem:[%s1741_s5] ss:$0 sm:$0xff] }
 0x28a   :  { %v871_v4 = vrot.slane %v870_v54, 4  ;;  %v879_v19 = vmax.f32 %v877_v1, %v878_v12  ;;  %v869_v42 = vmax.f32 %v867_v53, %v868_v27  ;;  %v1008_v27 = vld [vmem:[#allocation2] ss:$0 sm:$0xff] }
 0x28c   :  { %v872_v9 = vmax.f32 %v870_v54, %v871_v4  ;;  %v880_v24 = vrot.slane %v879_v19, 2  ;;  %v920_v54 = vmul.f32 %v1007_v46, %v869_v42 }
 0x28e   :  { %v873_v14 = vrot.slane %v872_v9, 2  ;;  %v881_v38 = vmax.f32 %v879_v19, %v880_v24  ;;  %v935_v4 = vrot.slane %v920_v54, 7 }
 0x290   :  { %v874_v15 = vmax.f32 %v872_v9, %v873_v14 }
 0x292   :  { %v875_v29 = vrot.slane %v874_v15, 1 }
 0x2b2   :  { %v1099_v17 = vpop.f32.mrf.mxu1 }
 0x2b3   :  { %v793_v49 = vadd.f32 %v1099_v17, %v1692_v63 }
 0x2b4   :  { %v784_v26 = vpop.f32.mrf.mxu1 }
 0x2b5   :  { %v785_v50 = vadd.f32 %v1692_v63, %v784_v26  ;;  %v825_v8 = vmax.f32 %v793_v49, 0.0 }
 0x2b6   :  { %v1100_v28 = vpop.f32.mrf.mxu1 }
 0x2b7   :  { %v796_v51 = vadd.f32 %v1100_v28, %v1692_v63  ;;  %v823_v58 = vmax.f32 %v785_v50, 0.0  ;;  %v860_v28 = vmax.f32 %v858_v62, %v859_v16 }
 0x2b8   :  { %v787_v31 = vpop.f32.mrf.mxu1 }
 0x2b9   :  { %v788_v39 = vadd.f32 %v1692_v63, %v787_v31  ;;  %v826_v59 = vmax.f32 %v796_v51, 0.0  ;;  %v861_v43 = vrot.slane %v860_v28, 1  ;;  %v882_v51 = vrot.slane %v881_v38, 1 }
 0x2bb   :  { %v824_v47 = vmax.f32 %v788_v39, 0.0  ;;  %v851_v36 = vsel %vm835_vm14, %v826_v59, 0.0  ;;  %v862_v55 = vmax.f32 %v860_v28, %v861_v43  ;;  %v883_v60 = vmax.f32 %v881_v38, %v882_v51 }
 0x2bc   :  { %v891_v11 = vmax.f32 %v825_v8, %v851_v36 }
 0x2bd   :  { %v849_v56 = vsel %vm835_vm14, %v824_v47, 0.0  ;;  %v876_v47 = vmax.f32 %v874_v15, %v875_v29  ;;  %v922_v7 = vmul.f32 %v1007_v46, %v883_v60 }
 0x2be   :  { %v884_v5 = vmax.f32 %v823_v58, %v849_v56  ;;  %v892_v21 = vrot.slane %v891_v11, 4 }
 0x2bf   :  { %v921_v56 = vmul.f32 %v1007_v46, %v876_v47 }
 0x2c0   :  { %v885_v10 = vrot.slane %v884_v5, 4  ;;  %v893_v25 = vmax.f32 %v891_v11, %v892_v21 }
 0x2c1   :  { %v938_v1 = vrot.slane %v921_v56, 6 }
 0x2c2   :  { %v886_v18 = vmax.f32 %v884_v5, %v885_v10  ;;  %v894_v34 = vrot.slane %v893_v25, 2  ;;  %v919_v5 = vmul.f32 %v1007_v46, %v862_v55 }
 0x2c4   :  { %v887_v22 = vrot.slane %v886_v18, 2  ;;  %v895_v33 = vmax.f32 %v893_v25, %v894_v34  ;;  %v937_v12 = vsel %vm936_vm1, %v935_v4, %v919_v5 }
 0x2c5   :  { %v940_v14 = vsel %vm939_vm4, %v938_v1, %v937_v12 }
 0x2c6   :  { %v888_v31 = vmax.f32 %v886_v18, %v887_v22  ;;  %v896_v61 = vrot.slane %v895_v33, 1  ;;  %v941_v18 = vrot.slane %v922_v7, 5 }
 0x2c8   :  { %v889_v37 = vrot.slane %v888_v31, 1  ;;  %v897_v8 = vmax.f32 %v895_v33, %v896_v61  ;;  %v943_v53 = vsel %vm942_vm10, %v941_v18, %v940_v14 }
 0x2ca   :  { %v890_v57 = vmax.f32 %v888_v31, %v889_v37  ;;  %v924_v19 = vmul.f32 %v1007_v46, %v897_v8 }
 0x2cc   :  { %v923_v36 = vmul.f32 %v1007_v46, %v890_v57  ;;  %v947_v22 = vrot.slane %v924_v19, 3 }
 0x2ce   :  { %v944_v11 = vrot.slane %v923_v36, 4 }
 0x2d0   :  { %v946_v15 = vsel %vm945_vm8, %v944_v11, %v943_v53 }
 0x2d1   :  { %v949_v24 = vsel %vm948_vm11, %v947_v22, %v946_v15 }
 0x2e9   :  { %v1103_v0 = vpop.f32.mrf.mxu1 }
 0x2ea   :  { %v809_v17 = vadd.f32 %v1103_v0, %v1692_v63 }
 0x2eb   :  { %v800_v23 = vpop.f32.mrf.mxu1 }
 0x2ec   :  { %v801_v32 = vadd.f32 %v1692_v63, %v800_v23  ;;  %v829_v41 = vmax.f32 %v809_v17, 0.0 }
 0x2ed   :  { %v1104_v26 = vpop.f32.mrf.mxu1 }
 0x2ee   :  { %v812_v3 = vadd.f32 %v1104_v26, %v1692_v63  ;;  %v827_v48 = vmax.f32 %v801_v32, 0.0 }
 0x2ef   :  { %v803_v35 = vpop.f32.mrf.mxu1 }
 0x2f0   :  { %v830_v39 = vmax.f32 %v812_v3, 0.0  ;;  %v804_v40 = vadd.f32 %v1692_v63, %v803_v35 }
 0x2f2   :  { %v855_v44 = vsel %vm835_vm14, %v830_v39, 0.0  ;;  %v828_v45 = vmax.f32 %v804_v40, 0.0 }
 0x2f3   :  { %v905_v50 = vmax.f32 %v829_v41, %v855_v44 }
 0x2f4   :  { %v853_v63 = vsel %vm835_vm14, %v828_v45, 0.0 }
 0x2f5   :  { %v906_v30 = vrot.slane %v905_v50, 4  ;;  %v898_v52 = vmax.f32 %v827_v48, %v853_v63 }
 0x2f7   :  { %v907_v58 = vmax.f32 %v905_v50, %v906_v30  ;;  %v899_v59 = vrot.slane %v898_v52, 4 }
 0x2f9   :  { %v908_v2 = vrot.slane %v907_v58, 2  ;;  %v900_v49 = vmax.f32 %v898_v52, %v899_v59 }
 0x2fb   :  { %v909_v6 = vmax.f32 %v907_v58, %v908_v2  ;;  %v901_v20 = vrot.slane %v900_v49, 2 }
 0x2fd   :  { %v910_v9 = vrot.slane %v909_v6, 1  ;;  %v902_v10 = vmax.f32 %v900_v49, %v901_v20 }
 0x2ff   :  { %v903_v13 = vrot.slane %v902_v10, 1  ;;  %v911_v62 = vmax.f32 %v909_v6, %v910_v9 }
 0x301   :  { %v904_v21 = vmax.f32 %v902_v10, %v903_v13  ;;  %v926_v0 = vmul.f32 %v1007_v46, %v911_v62 }
 0x303   :  { %v925_v16 = vmul.f32 %v1007_v46, %v904_v21  ;;  %v953_v25 = vrot.slane %v926_v0, 1 }
 0x305   :  { %v950_v23 = vrot.slane %v925_v16, 2 }
 0x307   :  { %v952_v17 = vsel %vm951_vm6, %v950_v23, %v949_v24 }
 0x308   :  { %v955_v26 = vsel %vm954_vm7, %v953_v25, %v952_v17 }
 0x309   :  { %957 = vadd.xlane.f32.xlu1 %v955_v26 }
 0x392   :  { %v958_v28 = vpop.xlane.xlu1 %957 }
 0x393   :  { %v966_v3 = vadd.f32 %v1008_v27, %v958_v28 }
 0x395   :  { %968 = vst.msk [vmem:[%s1742_s7] sm:$0xff] %vm967_vm0, %v966_v3 }

</bundles_post_ra>
